<compile_context>
chip_gen: v7x
topology: tpu7x:2x2x1
jax: 0.10.0
libtpu: 0.0.40
codegen_flags: <defaults>
</compile_context>

<pallas_src>
import jax
import jax.numpy as jnp
from jax.experimental import pallas as pl
from jax.experimental.pallas import tpu as pltpu

_BN_EPS = 1e-5
_LANE = 128
_NEG_BIG = -1e30  # pad-lane logit bias: exp() underflows to 0 in the softmax sum


def _round_up(n, m):
    return (n + m - 1) // m * m


def _cdiv(a, b):
    return (a + b - 1) // b


# --------------------------------------------------------------------------------------
# Kernel
# --------------------------------------------------------------------------------------
def _hypertensor_kernel(x_ref, w_ht_ref, w1_ref, w2_ref, w3_ref, vec_ref, out_ref):
    # vec_ref rows: 0 b_ht', 1 A_out, 2 C_out, 3 b1', 4 b2', 5 b3 (pad lanes = -1e30)
    b_ht = vec_ref[0:1, :]
    a_out = vec_ref[1:2, :]
    c_out = vec_ref[2:3, :]
    b1 = vec_ref[3:4, :]
    b2 = vec_ref[4:5, :]
    b3 = vec_ref[5:6, :]

    # x arrives as f32 (single HBM pass); cast to bf16 on the VPU for the MXU.
    x_bf16 = x_ref[...].astype(jnp.bfloat16)

    # HypertensorLayer: (x * W).sum(spatial) == matmul; input_bn folded into W_ht'/b_ht'.
    z = jnp.dot(x_bf16, w_ht_ref[...], preferred_element_type=jnp.float32) + b_ht
    # tanh*scale, (z*0.5)^2 and output_bn collapse to  relu(tanh(z)^2 * A_out + C_out).
    t = jnp.tanh(z)
    h = jnp.maximum(t * t * a_out + c_out, 0.0)

    # fc1 (+bn1 folded) -> relu
    h = jnp.maximum(
        jnp.dot(h.astype(jnp.bfloat16), w1_ref[...],
                preferred_element_type=jnp.float32) + b1, 0.0)
    # fc2 (+bn2 folded) -> relu
    h = jnp.maximum(
        jnp.dot(h.astype(jnp.bfloat16), w2_ref[...],
                preferred_element_type=jnp.float32) + b2, 0.0)
    # fc3 -> log_softmax (pad lanes carry -1e30 bias so they don't affect max/sum)
    logits = jnp.dot(h.astype(jnp.bfloat16), w3_ref[...],
                     preferred_element_type=jnp.float32) + b3

    m = jnp.max(logits, axis=1, keepdims=True)
    shifted = logits - m
    lse = jnp.log(jnp.sum(jnp.exp(shifted), axis=1, keepdims=True))
    out_ref[...] = (shifted - lse).astype(out_ref.dtype)  # bf16 store: halves writeback


# --------------------------------------------------------------------------------------
# Wrapper
# --------------------------------------------------------------------------------------
def _choose_tile(B, max_block_b):
    """Pick (tb, padded_b): <=7 rows of pad waste, >=2 grid steps when B is big enough."""
    n_blocks = max(1, _cdiv(B, max_block_b))
    if n_blocks == 1 and B >= 16:
        n_blocks = 2  # v7x: make sure both TensorCores get a block
    tb = _round_up(_cdiv(B, n_blocks), 8)
    padded_b = _round_up(B, tb)
    return tb, padded_b


def hypertensor_mnist_forward(x, packed, *, max_block_b=1024):
    """x: (B, H, W) float. Returns (B, num_classes) float32 log-probs."""
    B = x.shape[0]
    x_flat = x.reshape(B, -1).astype(jnp.float32)
    K = packed["w_ht"].shape[0]            # 128-padded input feature dim
    n_out = packed["num_classes"]

    tb, padded_b = _choose_tile(B, max_block_b)
    x_pad = jnp.pad(x_flat, ((0, padded_b - B), (0, K - x_flat.shape[1])))
    grid = (padded_b // tb,)

    # Explicit scoped-VMEM budget (v5e default is only 16 MiB): double-buffered f32 x tile
    # + bf16 out tile + generous room for f32 temporaries + resident weights/slab.
    vmem_limit = int(min(64 * 1024 * 1024,
                         max(16 * 1024 * 1024,
                             tb * (2 * K * 4 + 2 * _LANE * 2 + 6 * _LANE * 4)
                             + (2 << 20))))

    weight_bytes = (K * _LANE + 3 * _LANE * _LANE) * 2 + 8 * _LANE * 4
    cost = pl.CostEstimate(
        flops=2 * padded_b * (K * _LANE + 3 * _LANE * _LANE),
        transcendentals=3 * padded_b * _LANE,           # tanh + exp + log (advisory)
        bytes_accessed=padded_b * K * 4 + padded_b * _LANE * 2 + weight_bytes,
    )

    # NOTE: for very small tiles (latency-bound serving) a pipeline_mode=pl.Buffered(3)
    # on the x / out specs would deepen the pipeline; not needed once tb >= 512.
    out = pl.pallas_call(
        _hypertensor_kernel,
        out_shape=jax.ShapeDtypeStruct((padded_b, _LANE), jnp.bfloat16),
        grid=grid,
        in_specs=[
            pl.BlockSpec((tb, K), lambda i: (i, 0)),           # x: tiled over batch
            pl.BlockSpec((K, _LANE), lambda i: (0, 0)),        # W_ht' (resident)
            pl.BlockSpec((_LANE, _LANE), lambda i: (0, 0)),    # W1'
            pl.BlockSpec((_LANE, _LANE), lambda i: (0, 0)),    # W2'
            pl.BlockSpec((_LANE, _LANE), lambda i: (0, 0)),    # W3
            pl.BlockSpec((8, _LANE), lambda i: (0, 0)),        # packed bias/affine slab
        ],
        out_specs=pl.BlockSpec((tb, _LANE), lambda i: (i, 0)),
        compiler_params=pltpu.CompilerParams(
            dimension_semantics=("parallel",),
            vmem_limit_bytes=vmem_limit),
        cost_estimate=cost,
    )(x_pad, packed["w_ht"], packed["w1"], packed["w2"], packed["w3"],
      packed["vecs"])
    # Tiny slice + cast back to the module's f32 contract (writeback itself was bf16).
    return out[:B, :n_out].astype(jnp.float32)


# --------------------------------------------------------------------------------------
# Parameters: raw (PyTorch-shaped) + host-side folding/packing
# --------------------------------------------------------------------------------------
def init_params(key, input_shape=(16, 16), hidden_size=32, hyperoperation_order=2):
    """Raw parameters matching the PyTorch module's shapes (with non-trivial BN stats)."""
    fc1_size = hidden_size // (hyperoperation_order - 1)
    scale = 0.01 / (2 ** (hyperoperation_order - 1))
    ks = jax.random.split(key, 8)

    def bn_stats(k, n):
        k1, k2, k3, k4 = jax.random.split(k, 4)
        return {
            "gamma": jax.random.uniform(k1, (n,), jnp.float32, 0.5, 1.5),
            "beta": jax.random.normal(k2, (n,), jnp.float32) * 0.1,
            "mean": jax.random.normal(k3, (n,), jnp.float32) * 0.1,
            "var": jax.random.uniform(k4, (n,), jnp.float32, 0.5, 1.5),
        }

    def linear(k, n_in, n_out):
        bound = 1.0 / float(n_in) ** 0.5
        kw, kb = jax.random.split(k)
        w = jax.random.uniform(kw, (n_out, n_in), jnp.float32, -bound, bound)
        b = jax.random.uniform(kb, (n_out,), jnp.float32, -bound, bound)
        return w, b

    w_ht = jax.random.normal(ks[0], (hidden_size,) + tuple(input_shape), jnp.float32) * scale
    w1, b1 = linear(ks[1], hidden_size, fc1_size)
    w2, b2 = linear(ks[2], fc1_size, 64)
    w3, b3 = linear(ks[3], 64, 10)

    return {
        "w_ht": w_ht, "b_ht": jnp.zeros((hidden_size,), jnp.float32),
        "bn_in": bn_stats(ks[4], hidden_size),
        "scale": jnp.full((1,), scale, jnp.float32),
        "bn_out": bn_stats(ks[5], hidden_size),
        "w1": w1, "b1": b1, "bn1": bn_stats(ks[6], fc1_size),
        "w2": w2, "b2": b2, "bn2": bn_stats(ks[7], 64),
        "w3": w3, "b3": b3,
    }


def prepare_params(raw):
    """Fold eval-mode BN + scale into weights/affines, pad to 128 lanes, pack, cast to bf16."""
    def affine(bn):
        a = bn["gamma"] * jax.lax.rsqrt(bn["var"] + _BN_EPS)
        return a, bn["beta"] - bn["mean"] * a

    hidden = raw["w_ht"].shape[0]
    w_ht = raw["w_ht"].reshape(hidden, -1).T              # (in_feats, hidden)
    in_feats = w_ht.shape[0]

    a_i, c_i = affine(raw["bn_in"])                       # fold input_bn into W_ht/b_ht
    w_ht = w_ht * a_i[None, :]
    b_ht = raw["b_ht"] * a_i + c_i

    a_o, c_o = affine(raw["bn_out"])                      # fold (0.5*scale)^2 + output_bn
    a_out = (0.5 * raw["scale"]) ** 2 * a_o
    c_out = c_o

    a1, c1 = affine(raw["bn1"])                           # fold bn1 into fc1
    w1 = raw["w1"].T * a1[None, :]
    b1 = raw["b1"] * a1 + c1
    a2, c2 = affine(raw["bn2"])                           # fold bn2 into fc2
    w2 = raw["w2"].T * a2[None, :]
    b2 = raw["b2"] * a2 + c2
    w3 = raw["w3"].T
    b3 = raw["b3"]

    k_pad = _round_up(in_feats, _LANE)

    def pad2(w, rows, cols):
        return jnp.pad(w, ((0, rows - w.shape[0]), (0, cols - w.shape[1])))

    def pad1(v, n, fill=0.0):
        return jnp.pad(v, (0, n - v.shape[0]), constant_values=fill)

    vecs = jnp.zeros((8, _LANE), jnp.float32)
    vecs = vecs.at[0, :].set(pad1(b_ht, _LANE))
    vecs = vecs.at[1, :].set(pad1(a_out, _LANE))
    vecs = vecs.at[2, :].set(pad1(c_out, _LANE))
    vecs = vecs.at[3, :].set(pad1(b1, _LANE))
    vecs = vecs.at[4, :].set(pad1(b2, _LANE))
    vecs = vecs.at[5, :].set(pad1(b3, _LANE, fill=_NEG_BIG))

    return {
        "w_ht": pad2(w_ht, k_pad, _LANE).astype(jnp.bfloat16),
        "w1": pad2(w1, _LANE, _LANE).astype(jnp.bfloat16),
        "w2": pad2(w2, _LANE, _LANE).astype(jnp.bfloat16),
        "w3": pad2(w3, _LANE, _LANE).astype(jnp.bfloat16),
        "vecs": vecs,
        "num_classes": int(b3.shape[0]),
    }


# --------------------------------------------------------------------------------------
# Pure-JAX f32 reference on the RAW (unfolded) parameters
# --------------------------------------------------------------------------------------
def reference_forward(x, raw):
    B = x.shape[0]
    xf = x.reshape(B, -1).astype(jnp.float32)

    def bn(z, p):
        return (z - p["mean"]) * jax.lax.rsqrt(p["var"] + _BN_EPS) * p["gamma"] + p["beta"]

    hidden = raw["w_ht"].shape[0]
    z = xf @ raw["w_ht"].reshape(hidden, -1).T + raw["b_ht"]
    z = bn(z, raw["bn_in"])
    z = jnp.tanh(z) * raw["scale"]
    z = (z * 0.5) ** 2
    z = jnp.maximum(bn(z, raw["bn_out"]), 0.0)
    h = jnp.maximum(bn(z @ raw["w1"].T + raw["b1"], raw["bn1"]), 0.0)
    h = jnp.maximum(bn(h @ raw["w2"].T + raw["b2"], raw["bn2"]), 0.0)
    logits = h @ raw["w3"].T + raw["b3"]
    return jax.nn.log_softmax(logits, axis=1)


if __name__ == "__main__":
    key = jax.random.PRNGKey(0)
    k_x, k_x2, k_p = jax.random.split(key, 3)

    B, H, W, HIDDEN, ORDER = 8, 16, 16, 32, 2
    raw = init_params(k_p, input_shape=(H, W), hidden_size=HIDDEN,
                      hyperoperation_order=ORDER)
    packed = prepare_params(raw)

    # --- small-batch case (single grid step) ---
    x = jax.random.normal(k_x, (B, H, W), jnp.float32)
    out = hypertensor_mnist_forward(x, packed)
    out = jax.block_until_ready(out)
    ref = reference_forward(x, raw)
    assert out.shape == (B, 10)
    assert bool(jnp.all(jnp.isfinite(out)))
    # bf16 weights/activations + bf16 log-prob writeback vs full-f32 reference
    max_err = float(jnp.max(jnp.abs(out - ref)))
    assert max_err < 2e-2, f"mismatch vs reference: max abs err = {max_err}"
    assert jnp.allclose(jnp.sum(jnp.exp(out.astype(jnp.float32)), axis=1), 1.0, atol=1e-2)

    # --- larger batch exercising a multi-block grid (>=2 steps, minimal pad waste) ---
    B2 = 300
    x2 = jax.random.normal(k_x2, (B2, H, W), jnp.float32)
    out2 = jax.block_until_ready(hypertensor_mnist_forward(x2, packed))
    ref2 = reference_forward(x2, raw)
    assert out2.shape == (B2, 10)
    max_err2 = float(jnp.max(jnp.abs(out2 - ref2)))
    assert max_err2 < 2e-2, f"multi-block mismatch: max abs err = {max_err2}"
    assert jnp.allclose(jnp.sum(jnp.exp(out2.astype(jnp.float32)), axis=1), 1.0, atol=1e-2)

    print("KERNEL_OK")
</pallas_src>

<mosaic_0001>
module attributes {stable_mosaic.version = 11 : i64} {
  func.func @_hypertensor_kernel(%arg0: i32, %arg1: memref<8x256xf32, #tpu.memory_space<vmem>>, %arg2: memref<256x128xbf16, #tpu.memory_space<vmem>>, %arg3: memref<128x128xbf16, #tpu.memory_space<vmem>>, %arg4: memref<128x128xbf16, #tpu.memory_space<vmem>>, %arg5: memref<128x128xbf16, #tpu.memory_space<vmem>>, %arg6: memref<8x128xf32, #tpu.memory_space<vmem>>, %arg7: memref<8x128xbf16, #tpu.memory_space<vmem>>) attributes {dimension_semantics = [#tpu.dimension_semantics<parallel>], iteration_bounds = array<i64: 1>, scalar_prefetch = 0 : i64, scratch_operands = 0 : i64, tpu.core_type = #tpu.core_type<tc>, window_params = [{transform_indices = @transform_0, window_bounds = array<i64: 8, 256>}, {pipeline_mode = #tpu.pipeline_mode<synchronous>, transform_indices = @transform_1, window_bounds = array<i64: 256, 128>}, {pipeline_mode = #tpu.pipeline_mode<synchronous>, transform_indices = @transform_2, window_bounds = array<i64: 128, 128>}, {pipeline_mode = #tpu.pipeline_mode<synchronous>, transform_indices = @transform_3, window_bounds = array<i64: 128, 128>}, {pipeline_mode = #tpu.pipeline_mode<synchronous>, transform_indices = @transform_4, window_bounds = array<i64: 128, 128>}, {pipeline_mode = #tpu.pipeline_mode<synchronous>, transform_indices = @transform_5, window_bounds = array<i64: 8, 128>}, {transform_indices = @transform_6, window_bounds = array<i64: 8, 128>}]} {
    %c0 = arith.constant 0 : index
    %c0_0 = arith.constant 0 : index
    %0 = vector.load %arg6[%c0, %c0_0] : memref<8x128xf32, #tpu.memory_space<vmem>>, vector<1x128xf32>
    %c1 = arith.constant 1 : index
    %c0_1 = arith.constant 0 : index
    %1 = vector.load %arg6[%c1, %c0_1] : memref<8x128xf32, #tpu.memory_space<vmem>>, vector<1x128xf32>
    %c2 = arith.constant 2 : index
    %c0_2 = arith.constant 0 : index
    %2 = vector.load %arg6[%c2, %c0_2] : memref<8x128xf32, #tpu.memory_space<vmem>>, vector<1x128xf32>
    %c3 = arith.constant 3 : index
    %c0_3 = arith.constant 0 : index
    %3 = vector.load %arg6[%c3, %c0_3] : memref<8x128xf32, #tpu.memory_space<vmem>>, vector<1x128xf32>
    %c4 = arith.constant 4 : index
    %c0_4 = arith.constant 0 : index
    %4 = vector.load %arg6[%c4, %c0_4] : memref<8x128xf32, #tpu.memory_space<vmem>>, vector<1x128xf32>
    %c5 = arith.constant 5 : index
    %c0_5 = arith.constant 0 : index
    %5 = vector.load %arg6[%c5, %c0_5] : memref<8x128xf32, #tpu.memory_space<vmem>>, vector<1x128xf32>
    %c0_6 = arith.constant 0 : index
    %c0_7 = arith.constant 0 : index
    %6 = vector.load %arg1[%c0_6, %c0_7] : memref<8x256xf32, #tpu.memory_space<vmem>>, vector<8x256xf32>
    %7 = arith.truncf %6 : vector<8x256xf32> to vector<8x256xbf16>
    %c0_8 = arith.constant 0 : index
    %c0_9 = arith.constant 0 : index
    %8 = vector.load %arg2[%c0_8, %c0_9] : memref<256x128xbf16, #tpu.memory_space<vmem>>, vector<256x128xbf16>
    %cst = arith.constant dense<0.000000e+00> : vector<8x128xf32>
    %9 = tpu.matmul %7, %8, %cst {dimension_numbers = #tpu.dot_dimension_numbers<[1], [0], [0], [1], [0, 0, 1, 1], [], []>} : vector<8x256xbf16>, vector<256x128xbf16>, vector<8x128xf32> -> vector<8x128xf32>
    %10 = vector.broadcast %0 : vector<1x128xf32> to vector<8x128xf32>
    %11 = arith.addf %9, %10 : vector<8x128xf32>
    %12 = math.tanh %11 : vector<8x128xf32>
    %13 = arith.mulf %12, %12 : vector<8x128xf32>
    %14 = vector.broadcast %1 : vector<1x128xf32> to vector<8x128xf32>
    %15 = arith.mulf %13, %14 : vector<8x128xf32>
    %16 = vector.broadcast %2 : vector<1x128xf32> to vector<8x128xf32>
    %17 = arith.addf %15, %16 : vector<8x128xf32>
    %cst_10 = arith.constant 0.000000e+00 : f32
    %18 = vector.broadcast %cst_10 : f32 to vector<8x128xf32>
    %19 = arith.maximumf %17, %18 : vector<8x128xf32>
    %20 = arith.truncf %19 : vector<8x128xf32> to vector<8x128xbf16>
    %c0_11 = arith.constant 0 : index
    %c0_12 = arith.constant 0 : index
    %21 = vector.load %arg3[%c0_11, %c0_12] : memref<128x128xbf16, #tpu.memory_space<vmem>>, vector<128x128xbf16>
    %cst_13 = arith.constant dense<0.000000e+00> : vector<8x128xf32>
    %22 = tpu.matmul %20, %21, %cst_13 {dimension_numbers = #tpu.dot_dimension_numbers<[1], [0], [0], [1], [0, 0, 1, 1], [], []>} : vector<8x128xbf16>, vector<128x128xbf16>, vector<8x128xf32> -> vector<8x128xf32>
    %23 = vector.broadcast %3 : vector<1x128xf32> to vector<8x128xf32>
    %24 = arith.addf %22, %23 : vector<8x128xf32>
    %cst_14 = arith.constant 0.000000e+00 : f32
    %25 = vector.broadcast %cst_14 : f32 to vector<8x128xf32>
    %26 = arith.maximumf %24, %25 : vector<8x128xf32>
    %27 = arith.truncf %26 : vector<8x128xf32> to vector<8x128xbf16>
    %c0_15 = arith.constant 0 : index
    %c0_16 = arith.constant 0 : index
    %28 = vector.load %arg4[%c0_15, %c0_16] : memref<128x128xbf16, #tpu.memory_space<vmem>>, vector<128x128xbf16>
    %cst_17 = arith.constant dense<0.000000e+00> : vector<8x128xf32>
    %29 = tpu.matmul %27, %28, %cst_17 {dimension_numbers = #tpu.dot_dimension_numbers<[1], [0], [0], [1], [0, 0, 1, 1], [], []>} : vector<8x128xbf16>, vector<128x128xbf16>, vector<8x128xf32> -> vector<8x128xf32>
    %30 = vector.broadcast %4 : vector<1x128xf32> to vector<8x128xf32>
    %31 = arith.addf %29, %30 : vector<8x128xf32>
    %cst_18 = arith.constant 0.000000e+00 : f32
    %32 = vector.broadcast %cst_18 : f32 to vector<8x128xf32>
    %33 = arith.maximumf %31, %32 : vector<8x128xf32>
    %34 = arith.truncf %33 : vector<8x128xf32> to vector<8x128xbf16>
    %c0_19 = arith.constant 0 : index
    %c0_20 = arith.constant 0 : index
    %35 = vector.load %arg5[%c0_19, %c0_20] : memref<128x128xbf16, #tpu.memory_space<vmem>>, vector<128x128xbf16>
    %cst_21 = arith.constant dense<0.000000e+00> : vector<8x128xf32>
    %36 = tpu.matmul %34, %35, %cst_21 {dimension_numbers = #tpu.dot_dimension_numbers<[1], [0], [0], [1], [0, 0, 1, 1], [], []>} : vector<8x128xbf16>, vector<128x128xbf16>, vector<8x128xf32> -> vector<8x128xf32>
    %37 = vector.broadcast %5 : vector<1x128xf32> to vector<8x128xf32>
    %38 = arith.addf %36, %37 : vector<8x128xf32>
    %cst_22 = arith.constant dense<0xFF800000> : vector<8xf32>
    %39 = vector.multi_reduction <maximumf>, %38, %cst_22 [1] : vector<8x128xf32> to vector<8xf32>
    %40 = vector.shape_cast %39 : vector<8xf32> to vector<8x1xf32>
    %41 = vector.broadcast %40 : vector<8x1xf32> to vector<8x128xf32>
    %42 = arith.subf %38, %41 : vector<8x128xf32>
    %43 = math.exp %42 : vector<8x128xf32>
    %cst_23 = arith.constant dense<0.000000e+00> : vector<8xf32>
    %44 = vector.multi_reduction <add>, %43, %cst_23 [1] : vector<8x128xf32> to vector<8xf32>
    %45 = vector.shape_cast %44 : vector<8xf32> to vector<8x1xf32>
    %46 = math.log %45 : vector<8x1xf32>
    %47 = vector.broadcast %46 : vector<8x1xf32> to vector<8x128xf32>
    %48 = arith.subf %42, %47 : vector<8x128xf32>
    %49 = arith.truncf %48 : vector<8x128xf32> to vector<8x128xbf16>
    %c0_24 = arith.constant 0 : index
    %c0_25 = arith.constant 0 : index
    %50 = vector.load %arg7[%c0_24, %c0_25] : memref<8x128xbf16, #tpu.memory_space<vmem>>, vector<8x128xbf16>
    tpu.vector_store %arg7[%c0_24, %c0_25], %49 {strides = array<i32>} : memref<8x128xbf16, #tpu.memory_space<vmem>>, vector<8x128xbf16>,
    return
  }
  func.func @transform_0(%arg0: i32) -> (i32, i32) {
    %c0_i32 = arith.constant 0 : i32
    %c0_i32_0 = arith.constant 0 : i32
    return %arg0, %c0_i32 : i32, i32
  }
  func.func @transform_1(%arg0: i32) -> (i32, i32) {
    %c0_i32 = arith.constant 0 : i32
    %c0_i32_0 = arith.constant 0 : i32
    %c0_i32_1 = arith.constant 0 : i32
    return %c0_i32, %c0_i32_0 : i32, i32
  }
  func.func @transform_2(%arg0: i32) -> (i32, i32) {
    %c0_i32 = arith.constant 0 : i32
    %c0_i32_0 = arith.constant 0 : i32
    %c0_i32_1 = arith.constant 0 : i32
    return %c0_i32, %c0_i32_0 : i32, i32
  }
  func.func @transform_3(%arg0: i32) -> (i32, i32) {
    %c0_i32 = arith.constant 0 : i32
    %c0_i32_0 = arith.constant 0 : i32
    %c0_i32_1 = arith.constant 0 : i32
    return %c0_i32, %c0_i32_0 : i32, i32
  }
  func.func @transform_4(%arg0: i32) -> (i32, i32) {
    %c0_i32 = arith.constant 0 : i32
    %c0_i32_0 = arith.constant 0 : i32
    %c0_i32_1 = arith.constant 0 : i32
    return %c0_i32, %c0_i32_0 : i32, i32
  }
  func.func @transform_5(%arg0: i32) -> (i32, i32) {
    %c0_i32 = arith.constant 0 : i32
    %c0_i32_0 = arith.constant 0 : i32
    %c0_i32_1 = arith.constant 0 : i32
    return %c0_i32, %c0_i32_0 : i32, i32
  }
  func.func @transform_6(%arg0: i32) -> (i32, i32) {
    %c0_i32 = arith.constant 0 : i32
    %c0_i32_0 = arith.constant 0 : i32
    return %arg0, %c0_i32 : i32, i32
  }
}

</mosaic_0001>

<bundles_post_ra>
// kernel: tpu_custom_call.1
= control target key start
LH: loop header
LB: loop body
LE: loop exit
PB: predicated region body
PF: predicated region fallthrough
CT: control target
= control target key end

     0   :  { %11 = vsyncpa [#allocation3], 0  ;;  %s1172_s0 = inlined_call_operand.hbm [shape: f32[8,256], index: 0, kind: input, shape index: {}]   ;;  %s1173_s1 = inlined_call_operand.hbm [shape: bf16[256,128], index: 1, kind: input, shape index: {}]   ;;  %s1174_s2 = inlined_call_operand.hbm [shape: bf16[128,128], index: 2, kind: input, shape index: {}]   ;;  %s1175_s3 = inlined_call_operand.hbm [shape: bf16[128,128], index: 3, kind: input, shape index: {}]   ;;  %s1176_s4 = inlined_call_operand.hbm [shape: bf16[128,128], index: 4, kind: input, shape index: {}]   ;;  %s1177_s5 = inlined_call_operand.vmem [shape: f32[8,128], index: 5, kind: input, shape index: {}]   ;;  %s1178_s6 = inlined_call_operand.hbm [shape: bf16[8,128], index: 6, kind: output, shape index: {}]  }
   0x1   :  { %12 = vsyncpa [#allocation6], 0 }
   0x2   :  { %13 = vsyncpa [#allocation9], 0 }
   0x3   :  { %14 = vsyncpa [#allocation4], 0  ;;  %s995_s21 = smov [#allocation5]   ;;  %s855_s25 = scalar_lea.hbm %s1173_s1, 2048 }
   0x4   :  { %s30_s22 = sshll.u32 %s995_s21, 4  ;;  %p856_p0 = scmp.ne.s32.totalorder %s1173_s1, %s855_s25  ;;  %s31_s22 = int_to_ptr.vmem [resolvable:$true] %s30_s22 }
   0x5   :  { %p859_p1 = scmp.lt.u32.totalorder %s855_s25, %s1173_s1 }
   0x7   :  { %p861_p2 = pnand %p859_p1, %p856_p0 }
   0x9   :  { %864 = shalt.err (!%p861_p2)
}
   0xa   :  { %s865_s30 = scalar_lea.vmem %s31_s22, 2048  ;;  %p870_p4 = scmp.lt.s32.totalorder %s31_s22, %s31_s22 }
   0xb   :  { %p866_p3 = scmp.ne.s32.totalorder %s31_s22, %s865_s30  ;;  %p871_p5 = scmp.lt.s32.totalorder %s865_s30, %s865_s30 }
   0xd   :  { %p872_p6 = por %p871_p5, %p870_p4 }
   0xf   :  { %p873_p7 = pnand %p872_p6, %p866_p3 }
  0x11   :  { %876 = shalt.err (!%p873_p7)
}
  0x12   :  { %s996_s7 = smov 64   ;;  %s997_s8 = smov 4  }
  0x13   :  { %36 = dma.hbm_to_vmem [thread:$0]  %s1173_s1, 2048, %s31_s22, [#allocation6], %s996_s7, %s996_s7, %s997_s8  }
  0x14   :  { %s998_s11 = smov [#allocation8]   ;;  %s999_s13 = smov [#allocation2]  }
  0x15   :  { %s54_s12 = sshll.u32 %s998_s11, 4  ;;  %s21_s14 = sshll.u32 %s999_s13, 4  ;;  %s55_s12 = int_to_ptr.vmem [resolvable:$true] %s54_s12  ;;  %s22_s14 = int_to_ptr.vmem [resolvable:$true] %s21_s14 }
  0x16   :  { %s877_s17 = scalar_lea.hbm %s1175_s3, 1024 }
  0x17   :  { %p878_p8 = scmp.ne.s32.totalorder %s1175_s3, %s877_s17  ;;  %p881_p9 = scmp.lt.u32.totalorder %s877_s17, %s1175_s3 }
  0x19   :  { %p883_p10 = pnand %p881_p9, %p878_p8 }
  0x1b   :  { %886 = shalt.err (!%p883_p10)
}
  0x1c   :  { %s887_s1 = scalar_lea.vmem %s55_s12, 1024  ;;  %p892_p12 = scmp.lt.s32.totalorder %s55_s12, %s55_s12 }
  0x1d   :  { %p888_p11 = scmp.ne.s32.totalorder %s55_s12, %s887_s1  ;;  %p893_p13 = scmp.lt.s32.totalorder %s887_s1, %s887_s1 }
  0x1f   :  { %p894_p0 = por %p893_p13, %p892_p12 }
  0x21   :  { %p895_p1 = pnand %p894_p0, %p888_p11 }
  0x23   :  { %898 = shalt.err (!%p895_p1)
}
  0x24   :  { %60 = dma.hbm_to_vmem [thread:$0]  %s1175_s3, 1024, %s55_s12, [#allocation9], %s996_s7, %s996_s7, %s997_s8  }
  0x25   :  { %s899_s26 = scalar_lea.hbm %s1172_s0, 256 }
  0x26   :  { %p900_p2 = scmp.ne.s32.totalorder %s1172_s0, %s899_s26  ;;  %p903_p3 = scmp.lt.u32.totalorder %s899_s26, %s1172_s0 }
  0x28   :  { %p905_p4 = pnand %p903_p3, %p900_p2 }
  0x2a   :  { %908 = shalt.err (!%p905_p4)
}
  0x2b   :  { %s909_s9 = scalar_lea.vmem %s22_s14, 256  ;;  %p914_p6 = scmp.lt.s32.totalorder %s22_s14, %s22_s14 }
  0x2c   :  { %p910_p5 = scmp.ne.s32.totalorder %s22_s14, %s909_s9  ;;  %p915_p7 = scmp.lt.s32.totalorder %s909_s9, %s909_s9 }
  0x2e   :  { %p916_p8 = por %p915_p7, %p914_p6 }
  0x30   :  { %p917_p9 = pnand %p916_p8, %p910_p5 }
  0x32   :  { %920 = shalt.err (!%p917_p9)
}
  0x33   :  { %24 = dma.hbm_to_vmem [thread:$0]  %s1172_s0, 256, %s22_s14, [#allocation3]  }
  0x34   :  { %s1000_s11 = smov [#allocation7]   ;;  %s1001_s13 = smov [#allocation10]  }
  0x35   :  { %s42_s12 = sshll.u32 %s1000_s11, 4  ;;  %s66_s15 = sshll.u32 %s1001_s13, 4  ;;  %s43_s12 = int_to_ptr.vmem [resolvable:$true] %s42_s12  ;;  %s67_s15 = int_to_ptr.vmem [resolvable:$true] %s66_s15 }
  0x36   :  { %s921_s18 = scalar_lea.hbm %s1174_s2, 1024 }
  0x37   :  { %p922_p10 = scmp.ne.s32.totalorder %s1174_s2, %s921_s18  ;;  %p925_p11 = scmp.lt.u32.totalorder %s921_s18, %s1174_s2 }
  0x39   :  { %p927_p12 = pnand %p925_p11, %p922_p10 }
  0x3b   :  { %930 = shalt.err (!%p927_p12)
}
  0x3c   :  { %s931_s0 = scalar_lea.vmem %s43_s12, 1024  ;;  %p936_p0 = scmp.lt.s32.totalorder %s43_s12, %s43_s12 }
  0x3d   :  { %p932_p13 = scmp.ne.s32.totalorder %s43_s12, %s931_s0  ;;  %p937_p1 = scmp.lt.s32.totalorder %s931_s0, %s931_s0 }
  0x3f   :  { %p938_p2 = por %p937_p1, %p936_p0 }
  0x41   :  { %p939_p3 = pnand %p938_p2, %p932_p13 }
  0x43   :  { %942 = shalt.err (!%p939_p3)
}
  0x44   :  { %48 = dma.hbm_to_vmem [thread:$0]  %s1174_s2, 1024, %s43_s12, [#allocation6], %s996_s7, %s996_s7, %s997_s8  }
  0x45   :  { %s943_s25 = scalar_lea.hbm %s1176_s4, 1024 }
  0x46   :  { %p944_p4 = scmp.ne.s32.totalorder %s1176_s4, %s943_s25  ;;  %p947_p5 = scmp.lt.u32.totalorder %s943_s25, %s1176_s4 }
  0x48   :  { %p949_p6 = pnand %p947_p5, %p944_p4 }
  0x4a   :  { %952 = shalt.err (!%p949_p6)
}
  0x4b   :  { %s953_s30 = scalar_lea.vmem %s67_s15, 1024  ;;  %p958_p8 = scmp.lt.s32.totalorder %s67_s15, %s67_s15 }
  0x4c   :  { %p954_p7 = scmp.ne.s32.totalorder %s67_s15, %s953_s30  ;;  %p959_p9 = scmp.lt.s32.totalorder %s953_s30, %s953_s30 }
  0x4e   :  { %p960_p10 = por %p959_p9, %p958_p8 }
  0x50   :  { %p961_p11 = pnand %p960_p10, %p954_p7 }
  0x52   :  { %964 = shalt.err (!%p961_p11)
}
  0x53   :  { %72 = dma.hbm_to_vmem [thread:$0]  %s1176_s4, 1024, %s67_s15, [#allocation9], %s996_s7, %s996_s7, %s997_s8  }
  0x54   :  { %987 = dma.done.wait [#allocation3], 256  }
  0x55   :  { %988 = vsyncadd [#allocation3], 4294967040 }
  0x56   :  { %989 = dma.done.wait [#allocation6], 3072  }
  0x57   :  { %990 = vsyncadd [#allocation6], 4294964224 }
  0x58   :  { %991 = dma.done.wait [#allocation9], 2048  }
  0x59   :  { %992 = vsyncadd [#allocation9], 4294965248  ;;  %v1002_v0 = vmov 0.0   ;;  %v809_v1 = vld [vmem:[#allocation5 + $0x40] sm:$0xff]   ;;  %v811_v3 = vld [vmem:[#allocation5 + $0x48] sm:$0xff]   ;;  %vm1003_vm0 = vmmov 0  }
  0x5a   :  { %739 = vmatprep.subr.bf16.mxu1 %v1002_v0  ;;  %v810_v2 = vld [vmem:[#allocation5] sm:$0xff]   ;;  %690 = vmatprep.subr.bf16.mxu0 %v809_v1  ;;  %v812_v4 = vld [vmem:[#allocation5 + $0x8] sm:$0xff]   ;;  %v813_v5 = vld [vmem:[#allocation5 + $0x50] sm:$0xff]   ;;  %s1004_s19 = smov [#allocation11]  }
  0x5b   :  { %691 = vmatpush3.bf16.msra.mxu0 %v810_v2  ;;  %v814_v6 = vld [vmem:[#allocation5 + $0x10] sm:$0xff]   ;;  %v815_v7 = vld [vmem:[#allocation5 + $0x58] sm:$0xff]   ;;  %v817_v9 = vld [vmem:[#allocation5 + $0x60] sm:$0xff]   ;;  %755 = vmatprep.mubr.msk.bf16.mxu1 %vm1003_vm0, %v1002_v0  ;;  %s633_s20 = sshll.u32 %s1004_s19, 4  ;;  %s634_s20 = int_to_ptr.vmem [resolvable:$true] %s633_s20 }
  0x5c   :  { %692 = vmatprep.subr.bf16.mxu0 %v811_v3  ;;  %v816_v8 = vld [vmem:[#allocation5 + $0x18] sm:$0xff]   ;;  %v818_v10 = vld [vmem:[#allocation5 + $0x20] sm:$0xff]   ;;  %v819_v11 = vld [vmem:[#allocation5 + $0x68] sm:$0xff]   ;;  %p970_p13 = scmp.lt.s32.totalorder %s634_s20, %s634_s20 }
  0x5d   :  { %v98_v12 = vld [vmem:[#allocation2 + $0x8] sm:$0xff]  ;;  %v820_v13 = vld [vmem:[#allocation5 + $0x28] sm:$0xff]   ;;  %v825_v15 = vld [vmem:[#allocation7] sm:$0xff]  }
  0x5e   :  { %v100_v14 = vpack.c.bf16 %v98_v12, %v98_v12  ;;  %v821_v16 = vld [vmem:[#allocation5 + $0x70] sm:$0xff]   ;;  %740 = vmatpush3.bf16.msra.mxu1 %v825_v15  ;;  %v823_v18 = vld [vmem:[#allocation5 + $0x78] sm:$0xff]   ;;  %v826_v22 = vld [vmem:[#allocation7 + $0x8] sm:$0xff]  }
  0x5f   :  { %693 = vmatpush3.bf16.msra.mxu0 %v812_v4  ;;  %v822_v17 = vld [vmem:[#allocation5 + $0x30] sm:$0xff]   ;;  %741 = vmatprep.subr.bf16.mxu1 %v1002_v0  ;;  %v824_v19 = vld [vmem:[#allocation5 + $0x38] sm:$0xff]   ;;  %v829_v25 = vld [vmem:[#allocation7 + $0x20] sm:$0xff]  }
  0x60   :  { %694 = vmatprep.subr.bf16.mxu0 %v813_v5  ;;  %265 = vmatprep.mubr.bf16.mxu0 %v100_v14  ;;  %v97_v20 = vld [vmem:[#allocation2] sm:$0xff]  ;;  %v828_v24 = vld [vmem:[#allocation7 + $0x18] sm:$0xff]   ;;  %v830_v26 = vld [vmem:[#allocation7 + $0x28] sm:$0xff]  }
  0x61   :  { %v99_v21 = vpack.c.bf16 %v97_v20, %v97_v20  ;;  %v827_v23 = vld [vmem:[#allocation7 + $0x10] sm:$0xff]   ;;  %v832_v28 = vld [vmem:[#allocation7 + $0x38] sm:$0xff]   ;;  %v833_v29 = vld [vmem:[#allocation8] sm:$0xff]  }
  0x62   :  { %742 = vmatpush3.bf16.msra.mxu1 %v826_v22  ;;  %v831_v27 = vld [vmem:[#allocation7 + $0x30] sm:$0xff]   ;;  %v834_v30 = vld [vmem:[#allocation8 + $0x8] sm:$0xff]   ;;  %v836_v32 = vld [vmem:[#allocation8 + $0x18] sm:$0xff]  }
  0x63   :  { %695 = vmatpush3.bf16.msra.mxu0 %v814_v6  ;;  %743 = vmatprep.subr.bf16.mxu1 %v1002_v0  ;;  %v835_v31 = vld [vmem:[#allocation8 + $0x10] sm:$0xff]   ;;  %v837_v33 = vld [vmem:[#allocation8 + $0x20] sm:$0xff]   ;;  %v838_v34 = vld [vmem:[#allocation8 + $0x28] sm:$0xff]  }
  0x64   :  { %696 = vmatprep.subr.bf16.mxu0 %v815_v7  ;;  %v644_v36 = vld [vmem:[%s1177_s5] ss:$0 sm:$0xff]  ;;  %v661_v43 = vld [vmem:[%s1177_s5 + $0x1] ss:$0 sm:$0xff]  ;;  %v662_v45 = vld [vmem:[%s1177_s5 + $0x2] ss:$0 sm:$0xff] }
  0x65   :  { %v839_v50 = vld [vmem:[#allocation8 + $0x30] sm:$0xff]   ;;  %v840_v51 = vld [vmem:[#allocation8 + $0x38] sm:$0xff]   ;;  %v841_v52 = vld [vmem:[#allocation10] sm:$0xff]  }
  0x66   :  { %744 = vmatpush3.bf16.msra.mxu1 %v827_v23  ;;  %v842_v53 = vld [vmem:[#allocation10 + $0x8] sm:$0xff]   ;;  %v843_v54 = vld [vmem:[#allocation10 + $0x10] sm:$0xff]   ;;  %v844_v55 = vld [vmem:[#allocation10 + $0x18] sm:$0xff]  }
  0x67   :  { %697 = vmatpush3.bf16.msra.mxu0 %v816_v8  ;;  %745 = vmatprep.subr.bf16.mxu1 %v1002_v0  ;;  %v845_v56 = vld [vmem:[#allocation10 + $0x20] sm:$0xff]   ;;  %v846_v57 = vld [vmem:[#allocation10 + $0x28] sm:$0xff]   ;;  %v663_v58 = vld [vmem:[%s1177_s5 + $0x3] ss:$0 sm:$0xff] }
  0x68   :  { %698 = vmatprep.subr.bf16.mxu0 %v817_v9  ;;  %v847_v3 = vld [vmem:[#allocation10 + $0x30] sm:$0xff]   ;;  %v848_v4 = vld [vmem:[#allocation10 + $0x38] sm:$0xff]  }
  0x69   :  { %v672_v5 = vld [vmem:[%s1177_s5 + $0x4] ss:$0 sm:$0xff] }
  0x6a   :  { %746 = vmatpush3.bf16.msra.mxu1 %v828_v24 }
  0x6b   :  { %699 = vmatpush3.bf16.msra.mxu0 %v818_v10  ;;  %747 = vmatprep.subr.bf16.mxu1 %v1002_v0 }
  0x6c   :  { %700 = vmatprep.subr.bf16.mxu0 %v819_v11 }
  0x6e   :  { %748 = vmatpush3.bf16.msra.mxu1 %v829_v25 }
  0x6f   :  { %701 = vmatpush3.bf16.msra.mxu0 %v820_v13  ;;  %749 = vmatprep.subr.bf16.mxu1 %v1002_v0  ;;  %v681_v13 = vld [vmem:[%s1177_s5 + $0x5] ss:$0 sm:$0xff]  ;;  %s965_s5 = scalar_lea.vmem %s634_s20, 64 }
  0x70   :  { %702 = vmatprep.subr.bf16.mxu0 %v821_v16  ;;  %p966_p12 = scmp.ne.s32.totalorder %s634_s20, %s965_s5  ;;  %p971_p0 = scmp.lt.s32.totalorder %s965_s5, %s965_s5 }
  0x72   :  { %750 = vmatpush3.bf16.msra.mxu1 %v830_v26  ;;  %p972_p1 = por %p971_p0, %p970_p13 }
  0x73   :  { %703 = vmatpush3.bf16.msra.mxu0 %v822_v17  ;;  %751 = vmatprep.subr.bf16.mxu1 %v1002_v0 }
  0x74   :  { %704 = vmatprep.subr.bf16.mxu0 %v823_v18  ;;  %p973_p2 = pnand %p972_p1, %p966_p12 }
  0x76   :  { %752 = vmatpush3.bf16.msra.mxu1 %v831_v27 }
  0x77   :  { %705 = vmatpush3.bf16.msra.mxu0 %v824_v19  ;;  %753 = vmatprep.subr.bf16.mxu1 %v1002_v0 }
  0x78   :  { %759 = vmatprep.subr.bf16.mxu0 %v1002_v0 }
  0x7a   :  { %266 = vmatmul.mubr.bf16.vlgmr.msra.gmra.mrb[0].mxu0 %v99_v21  ;;  %754 = vmatpush3.bf16.msra.mxu1 %v832_v28 }
  0x7b   :  { %775 = vmatprep.mubr.msk.bf16.mxu0 %vm1003_vm0, %v1002_v0  ;;  %779 = vmatprep.subr.bf16.mxu1 %v1002_v0 }
  0x7c   :  { %760 = vmatpush3.bf16.msra.mxu0 %v833_v29 }
  0x7d   :  { %761 = vmatprep.subr.bf16.mxu0 %v1002_v0 }
  0x80   :  { %762 = vmatpush3.bf16.msra.mxu0 %v834_v30 }
  0x81   :  { %763 = vmatprep.subr.bf16.mxu0 %v1002_v0 }
  0x84   :  { %764 = vmatpush3.bf16.msra.mxu0 %v835_v31 }
  0x85   :  { %765 = vmatprep.subr.bf16.mxu0 %v1002_v0 }
  0x88   :  { %766 = vmatpush3.bf16.msra.mxu0 %v836_v32 }
  0x89   :  { %767 = vmatprep.subr.bf16.mxu0 %v1002_v0 }
  0x8c   :  { %768 = vmatpush3.bf16.msra.mxu0 %v837_v33 }
  0x8d   :  { %769 = vmatprep.subr.bf16.mxu0 %v1002_v0 }
  0x90   :  { %770 = vmatpush3.bf16.msra.mxu0 %v838_v34 }
  0x91   :  { %771 = vmatprep.subr.bf16.mxu0 %v1002_v0 }
  0x94   :  { %772 = vmatpush3.bf16.msra.mxu0 %v839_v50 }
  0x95   :  { %773 = vmatprep.subr.bf16.mxu0 %v1002_v0 }
  0x98   :  { %774 = vmatpush3.bf16.msra.mxu0 %v840_v51 }
 0x14d   :  { %v706_v35 = vpop.f32.mrb[0].mxu0 }
 0x14e   :  { %v707_v37 = vpop.f32.mrb[1].mxu0 }
 0x14f   :  { %v708_v38 = vadd.f32 %v707_v37, %v706_v35  ;;  %v709_v39 = vpop.f32.mrb[2].mxu0 }
 0x150   :  { %v710_v40 = vpop.f32.mrb[3].mxu0 }
 0x151   :  { %v268_v41 = vadd.f32 %v708_v38, %v644_v36 }
 0x153   :  { %849 = vtanh.f32 %v268_v41 }
 0x15d   :  { %v850_v42 = vpop.eup %849 }
 0x15e   :  { %v274_v44 = vmul.f32 %v850_v42, %v850_v42 }
 0x160   :  { %v279_v46 = vmul.f32 %v661_v43, %v274_v44 }
 0x162   :  { %v284_v47 = vadd.f32 %v662_v45, %v279_v46 }
 0x164   :  { %v285_v48 = vmax.f32 %v284_v47, 0.0 }
 0x166   :  { %v286_v49 = vpack.c.bf16 %v285_v48, %v285_v48 }
 0x168   :  { %756 = vmatmul.mubr.bf16.vlgmr.msra.gmra.mrb[0].mxu1 %v286_v49 }
 0x169   :  { %795 = vmatprep.mubr.msk.bf16.mxu1 %vm1003_vm0, %v1002_v0  ;;  %780 = vmatpush3.bf16.msra.mxu1 %v841_v52 }
 0x16a   :  { %781 = vmatprep.subr.bf16.mxu1 %v1002_v0 }
 0x16d   :  { %782 = vmatpush3.bf16.msra.mxu1 %v842_v53 }
 0x16e   :  { %783 = vmatprep.subr.bf16.mxu1 %v1002_v0 }
 0x171   :  { %784 = vmatpush3.bf16.msra.mxu1 %v843_v54 }
 0x172   :  { %785 = vmatprep.subr.bf16.mxu1 %v1002_v0 }
 0x175   :  { %786 = vmatpush3.bf16.msra.mxu1 %v844_v55 }
 0x176   :  { %787 = vmatprep.subr.bf16.mxu1 %v1002_v0 }
 0x179   :  { %788 = vmatpush3.bf16.msra.mxu1 %v845_v56 }
 0x17a   :  { %789 = vmatprep.subr.bf16.mxu1 %v1002_v0 }
 0x17d   :  { %790 = vmatpush3.bf16.msra.mxu1 %v846_v57 }
 0x17e   :  { %791 = vmatprep.subr.bf16.mxu1 %v1002_v0 }
 0x181   :  { %792 = vmatpush3.bf16.msra.mxu1 %v847_v3 }
 0x182   :  { %793 = vmatprep.subr.bf16.mxu1 %v1002_v0 }
 0x185   :  { %794 = vmatpush3.bf16.msra.mxu1 %v848_v4 }
 0x23b   :  { %v389_v59 = vpop.f32.mrb[0].mxu1 }
 0x23c   :  { %v390_v60 = vadd.f32 %v663_v58, %v389_v59  ;;  %v757_v61 = vpop.f32.mrb[1].mxu1 }
 0x23d   :  { %v392_v62 = vpop.f32.mrb[2].mxu1 }
 0x23e   :  { %v395_v63 = vmax.f32 %v390_v60, 0.0  ;;  %v758_v1 = vpop.f32.mrb[3].mxu1 }
 0x240   :  { %v396_v2 = vpack.c.bf16 %v395_v63, %v395_v63 }
 0x242   :  { %776 = vmatmul.mubr.bf16.vlgmr.msra.gmra.mrb[4].mxu0 %v396_v2 }
 0x315   :  { %v499_v6 = vpop.f32.mrb[4].mxu0 }
 0x316   :  { %v500_v7 = vadd.f32 %v672_v5, %v499_v6  ;;  %v777_v8 = vpop.f32.mrb[5].mxu0 }
 0x317   :  { %v502_v9 = vpop.f32.mrb[6].mxu0 }
 0x318   :  { %v505_v10 = vmax.f32 %v500_v7, 0.0  ;;  %v778_v11 = vpop.f32.mrb[7].mxu0 }
 0x31a   :  { %v506_v12 = vpack.c.bf16 %v505_v10, %v505_v10 }
 0x31c   :  { %796 = vmatmul.mubr.bf16.vlgmr.msra.gmra.mrb[4].mxu1 %v506_v12 }
 0x3ef   :  { %v609_v14 = vpop.f32.mrb[4].mxu1 }
 0x3f0   :  { %v610_v0 = vadd.f32 %v681_v13, %v609_v14  ;;  %v797_v15 = vpop.f32.mrb[5].mxu1 }
 0x3f1   :  { %v612_v16 = vpop.f32.mrb[6].mxu1 }
 0x3f2   :  { %615 = vmax.xlane.f32.xlu0 %v610_v0  ;;  %v798_v17 = vpop.f32.mrb[7].mxu1 }
 0x47f   :  { %v616_v18 = vpop.xlane.xlu0 %615 }
 0x480   :  { %v617_v19 = vsub.f32 %v610_v0, %v616_v18 }
 0x482   :  { %v618_v20 = vmul.f32 1.442695, %v617_v19 }
 0x484   :  { %851 = vpow2.f32 %v618_v20 }
 0x48e   :  { %v852_v21 = vpop.eup %851 }
 0x48f   :  { %620 = vadd.xlane.f32.xlu0 %v852_v21 }
 0x51c   :  { %v621_v22 = vpop.xlane.xlu0 %620 }
 0x51d   :  { %853 = vlog2.f32 %v621_v22 }
 0x527   :  { %v854_v23 = vpop.eup %853 }
 0x528   :  { %v623_v24 = vmul.f32 0.6931472, %v854_v23 }
 0x52a   :  { %v624_v25 = vsub.f32 %v617_v19, %v623_v24 }
 0x52c   :  { %v625_v26 = vpack.c.bf16 %v624_v25, %v624_v25 }
 0x52e   :  { %626 = vst [vmem:[#allocation11] sm:$0xf] %v625_v26 }
 0x52f   :  { %976 = shalt.err (!%p973_p2)
}
 0x530   :  { %s977_s0 = scalar_lea.hbm %s1178_s6, 64 }
 0x531   :  { %p978_p3 = scmp.ne.s32.totalorder %s1178_s6, %s977_s0  ;;  %p981_p4 = scmp.lt.u32.totalorder %s977_s0, %s1178_s6 }
 0x533   :  { %p983_p5 = pnand %p981_p4, %p978_p3 }
 0x535   :  { %986 = shalt.err (!%p983_p5)
}
 0x536   :  { %636 = dma.vmem_to_hbm [thread:$0]  %s634_s20, 64, %s1178_s6, [#allocation4]  }
 0x537   :  { %993 = dma.done.wait [#allocation4], 64  }
 0x538   :  { %994 = vsyncadd [#allocation4], 4294967232 }
 0x539   :  { %640 = vsyncpa [#allocation3], 1 }
 0x53a   :  { %641 = vsyncpa [#allocation6], 1 }
 0x53b   :  { %642 = vsyncpa [#allocation9], 1 }
 0x53c   :  { %643 = vsyncpa [#allocation4], 1 }

</bundles_post_ra>
